<compile_context>
chip_gen: v6e
topology: v6e:2x2x1
jax: 0.10.0
libtpu: 0.0.40
codegen_flags: <defaults>
</compile_context>

<pallas_src>
import jax
import jax.numpy as jnp
from jax.experimental import pallas as pl
from jax.experimental.pallas import tpu as pltpu

_LANES = 128


def _fir_kernel(x_ref, w_ref, o_ref):
    # x_ref: [tr, 128*K]  -- 128 batch elements per row, lane-dense
    # w_ref: [128*K, 128] -- block-diagonal weight, VMEM-resident (same block
    #                        every grid step)
    # o_ref: [tr, 128]    -- lane-dense output (128 batch results per row)
    o_ref[...] = jnp.dot(
        x_ref[...], w_ref[...], preferred_element_type=jnp.float32
    )


def fir_filter_forward(x, weight, *, tile_rows=256):
    """FIR filter forward pass (== nn.Linear(model_order, 1, bias=False)).

    x:      [batch, model_order] float32
    weight: [1, model_order]     float32 (PyTorch Linear weight layout)
    returns [batch, 1]           float32 (== x @ weight.T)
    """
    B, K = x.shape
    assert weight.shape == (1, K)

    # Fold 128 batch elements into the lane axis: [B, K] -> [rows, 128*K].
    # This reshape is free (contiguous row-major); padding is only needed when
    # B is not a multiple of 128 and is sliced off again below.
    b_pad = ((B + _LANES - 1) // _LANES) * _LANES
    rows = b_pad // _LANES
    x_p = x if b_pad == B else jnp.pad(x, ((0, b_pad - B), (0, 0)))
    x2 = x_p.reshape(rows, _LANES * K)

    # Row tile: 256 rows (= 32768 batch elems, ~2.5 MiB/tile) by default.
    # Clamp to the available rows; keep it a multiple of 8 (sublane rule)
    # unless it equals the full row extent.
    tr = max(1, min(tile_rows, rows))
    if tr != rows:
        tr = max(8, (tr // 8) * 8)
    grid = (pl.cdiv(rows, tr),)

    # Block-diagonal weight: W_bd[j*K + k, j] = w[k], zero elsewhere.
    # Built once (1.25 MiB for K=20); stays VMEM-resident across all steps.
    w_vec = weight.reshape(K).astype(jnp.float32)
    eye = jnp.eye(_LANES, dtype=jnp.float32)
    w_bd = (eye[:, None, :] * w_vec[None, :, None]).reshape(_LANES * K, _LANES)

    out2 = pl.pallas_call(
        _fir_kernel,
        out_shape=jax.ShapeDtypeStruct((rows, _LANES), jnp.float32),
        grid_spec=pltpu.PrefetchScalarGridSpec(
            num_scalar_prefetch=0,
            grid=grid,
            in_specs=[
                # x tile marches over the row (batch-tile) axis; lane extent
                # 128*K is a multiple of 128, sublane extent tr is a multiple
                # of 8 or the full dim -> (8,128) rule satisfied.
                pl.BlockSpec((tr, _LANES * K), lambda i: (i, 0)),
                # Same weight block every step -> VMEM-resident, DMA'd once.
                pl.BlockSpec((_LANES * K, _LANES), lambda i: (0, 0)),
            ],
            out_specs=pl.BlockSpec((tr, _LANES), lambda i: (i, 0)),
        ),
        compiler_params=pltpu.CompilerParams(
            # Embarrassingly parallel over batch tiles: lets v7x shard grid
            # steps across its 2 TensorCores.
            dimension_semantics=("parallel",),
        ),
        cost_estimate=pl.CostEstimate(
            flops=2 * rows * (_LANES * K) * _LANES,   # MXU flops (block-diag)
            transcendentals=0,
            bytes_accessed=4 * (rows * _LANES * K + _LANES * K * _LANES + rows * _LANES),
        ),
    )(x2, w_bd)

    # [rows, 128] -> [b_pad, 1] -> [B, 1]  (free contiguous reshape + slice).
    return out2.reshape(b_pad, 1)[:B]


if __name__ == "__main__":
    model_order = 20
    batch = 8

    key = jax.random.PRNGKey(0)
    kx, kw, kx2 = jax.random.split(key, 3)

    # Input window stack: [batch, model_order]
    x = jax.random.normal(kx, (batch, model_order), dtype=jnp.float32)

    # Weight in PyTorch nn.Linear layout [1, model_order], default-init range
    # U(-1/sqrt(in_features), 1/sqrt(in_features)).
    bound = 1.0 / (model_order ** 0.5)
    w = jax.random.uniform(
        kw, (1, model_order), dtype=jnp.float32, minval=-bound, maxval=bound
    )

    out = fir_filter_forward(x, w)
    jax.block_until_ready(out)
    ref = x @ w.T
    assert out.shape == (batch, 1)
    assert jnp.allclose(out, ref, atol=1e-5, rtol=1e-5)

    # Also exercise the multi-step gridded path (4 row-tiles of 8 rows each).
    x_big = jax.random.normal(kx2, (4096, model_order), dtype=jnp.float32)
    out_big = fir_filter_forward(x_big, w, tile_rows=8)
    jax.block_until_ready(out_big)
    assert out_big.shape == (4096, 1)
    assert jnp.allclose(out_big, x_big @ w.T, atol=1e-4, rtol=1e-4)

    print("KERNEL_OK")
</pallas_src>

<mosaic_0001>
module attributes {stable_mosaic.version = 11 : i64} {
  func.func @_fir_kernel(%arg0: i32, %arg1: memref<1x2560xf32, #tpu.memory_space<vmem>>, %arg2: memref<2560x128xf32, #tpu.memory_space<vmem>>, %arg3: memref<1x128xf32, #tpu.memory_space<vmem>>) attributes {dimension_semantics = [#tpu.dimension_semantics<parallel>], iteration_bounds = array<i64: 1>, scalar_prefetch = 0 : i64, scratch_operands = 0 : i64, tpu.core_type = #tpu.core_type<tc>, window_params = [{transform_indices = @transform_0, window_bounds = array<i64: 1, 2560>}, {pipeline_mode = #tpu.pipeline_mode<synchronous>, transform_indices = @transform_1, window_bounds = array<i64: 2560, 128>}, {transform_indices = @transform_2, window_bounds = array<i64: 1, 128>}]} {
    %c0 = arith.constant 0 : index
    %c0_0 = arith.constant 0 : index
    %0 = vector.load %arg1[%c0, %c0_0] : memref<1x2560xf32, #tpu.memory_space<vmem>>, vector<1x2560xf32>
    %c0_1 = arith.constant 0 : index
    %c0_2 = arith.constant 0 : index
    %1 = vector.load %arg2[%c0_1, %c0_2] : memref<2560x128xf32, #tpu.memory_space<vmem>>, vector<2560x128xf32>
    %cst = arith.constant dense<0.000000e+00> : vector<1x128xf32>
    %2 = tpu.matmul %0, %1, %cst {dimension_numbers = #tpu.dot_dimension_numbers<[1], [0], [0], [1], [0, 0, 1, 1], [], []>} : vector<1x2560xf32>, vector<2560x128xf32>, vector<1x128xf32> -> vector<1x128xf32>
    %c0_3 = arith.constant 0 : index
    %c0_4 = arith.constant 0 : index
    %3 = vector.load %arg3[%c0_3, %c0_4] : memref<1x128xf32, #tpu.memory_space<vmem>>, vector<1x128xf32>
    tpu.vector_store %arg3[%c0_3, %c0_4], %2 {strides = array<i32>} : memref<1x128xf32, #tpu.memory_space<vmem>>, vector<1x128xf32>,
    return
  }
  func.func @transform_0(%arg0: i32) -> (i32, i32) {
    %c0_i32 = arith.constant 0 : i32
    %c0_i32_0 = arith.constant 0 : i32
    return %arg0, %c0_i32 : i32, i32
  }
  func.func @transform_1(%arg0: i32) -> (i32, i32) {
    %c0_i32 = arith.constant 0 : i32
    %c0_i32_0 = arith.constant 0 : i32
    %c0_i32_1 = arith.constant 0 : i32
    return %c0_i32, %c0_i32_0 : i32, i32
  }
  func.func @transform_2(%arg0: i32) -> (i32, i32) {
    %c0_i32 = arith.constant 0 : i32
    %c0_i32_0 = arith.constant 0 : i32
    return %arg0, %c0_i32 : i32, i32
  }
}

</mosaic_0001>

<bundles_post_ra>
// kernel: tpu_custom_call.1
= control target key start
LH: loop header
LB: loop body
LE: loop exit
PB: predicated region body
PF: predicated region fallthrough
CT: control target
= control target key end

     0   :  { %7 = vsyncpa [#allocation3], 0  ;;  %s1697_s0 = inlined_call_operand.hbm [shape: f32[1,2560], index: 0, kind: input, shape index: {}]   ;;  %s1698_s1 = inlined_call_operand.hbm [shape: f32[2560,128], index: 1, kind: input, shape index: {}]   ;;  %s1699_s2 = inlined_call_operand.hbm [shape: f32[1,128], index: 2, kind: output, shape index: {}]  }
   0x1   :  { %8 = vsyncpa [#allocation6], 0 }
   0x2   :  { %9 = vsyncpa [#allocation4], 0  ;;  %s1602_s9 = smov [#allocation2]   ;;  %s1603_s11 = smov [#allocation5]  }
   0x3   :  { %s16_s10 = sshll.u32 %s1602_s9, 4  ;;  %s25_s12 = sshll.u32 %s1603_s11, 4  ;;  %s17_s10 = int_to_ptr.vmem [resolvable:$true] %s16_s10  ;;  %s26_s12 = int_to_ptr.vmem [resolvable:$true] %s25_s12 }
   0x4   :  { %s1544_s13 = scalar_lea.vmem %s17_s10, 320  ;;  %p1549_p1 = scmp.lt.s32.totalorder %s17_s10, %s17_s10 }
   0x5   :  { %p1545_p0 = scmp.ne.s32.totalorder %s17_s10, %s1544_s13  ;;  %p1550_p2 = scmp.lt.s32.totalorder %s1544_s13, %s1544_s13 }
   0x7   :  { %p1551_p3 = por %p1550_p2, %p1549_p1 }
   0x9   :  { %p1552_p4 = pnand %p1551_p3, %p1545_p0 }
   0xb   :  { %1555 = shalt.err (!%p1552_p4)
}
   0xc   :  { %19 = dma.hbm_to_vmem [thread:$0]  %s1697_s0, 320, %s17_s10, [#allocation3]  }
   0xd   :  { %s1564_s16 = scalar_lea.vmem %s26_s12, 40960  ;;  %p1569_p6 = scmp.lt.s32.totalorder %s26_s12, %s26_s12 }
   0xe   :  { %p1565_p5 = scmp.ne.s32.totalorder %s26_s12, %s1564_s16  ;;  %p1570_p7 = scmp.lt.s32.totalorder %s1564_s16, %s1564_s16 }
  0x10   :  { %p1571_p8 = por %p1570_p7, %p1569_p6 }
  0x12   :  { %p1572_p9 = pnand %p1571_p8, %p1565_p5 }
  0x14   :  { %1575 = shalt.err (!%p1572_p9)
}
  0x15   :  { %s1604_s17 = smov 128   ;;  %s1605_s18 = smov 8  }
  0x16   :  { %31 = dma.hbm_to_vmem [thread:$0]  %s1698_s1, 40960, %s26_s12, [#allocation6], %s1604_s17, %s1604_s17, %s1605_s18  }
  0x17   :  { %1596 = dma.done.wait [#allocation3], 320  }
  0x18   :  { %1597 = vsyncadd [#allocation3], 4294966976 }
  0x19   :  { %1598 = dma.done.wait [#allocation6], 40960  }
  0x1a   :  { %1599 = vsyncadd [#allocation6], 4294926336  ;;  %v72_v0 = vld [vmem:[#allocation5 + $0xf8] sm:$0xff]  ;;  %v71_v4 = vld [vmem:[#allocation5 + $0xf0] sm:$0xff]  ;;  %v364_v38 = vlaneseq  ;;  %s1606_s0 = smov [#allocation7]  }
  0x1b   :  { %v104_v1 = vld [vmem:[#allocation5 + $0x1f8] sm:$0xff]  ;;  %1181 = vmatprep.subr.mxu0 %v72_v0  ;;  %v103_v5 = vld [vmem:[#allocation5 + $0x1f0] sm:$0xff]  ;;  %v70_v8 = vld [vmem:[#allocation5 + $0xe8] sm:$0xff]  ;;  %s1171_s1 = sshll.u32 %s1606_s0, 4  ;;  %s1172_s1 = int_to_ptr.vmem [resolvable:$true] %s1171_s1 }
  0x1c   :  { %v56_v2 = vld [vmem:[#allocation5 + $0x78] sm:$0xff]  ;;  %1216 = vmatprep.subr.mxu1 %v104_v1  ;;  %v55_v6 = vld [vmem:[#allocation5 + $0x70] sm:$0xff]  ;;  %v102_v9 = vld [vmem:[#allocation5 + $0x1e8] sm:$0xff]  ;;  %v1628_v47 = vshrl.u32 %v364_v38, 7  ;;  %s1576_s21 = scalar_lea.vmem %s1172_s1, 16  ;;  %s1580_s22 = scalar_lea.vmem %s1172_s1, 32 }
  0x1d   :  { %v88_v3 = vld [vmem:[#allocation5 + $0x178] sm:$0xff]  ;;  %1182 = vmatpush3.msra.mxu0 %v56_v2  ;;  %v87_v7 = vld [vmem:[#allocation5 + $0x170] sm:$0xff]  ;;  %v54_v10 = vld [vmem:[#allocation5 + $0x68] sm:$0xff]  ;;  %p1577_p10 = scmp.ne.s32.totalorder %s1172_s1, %s1576_s21  ;;  %p1581_p11 = scmp.lt.s32.totalorder %s1172_s1, %s1172_s1 }
  0x1e   :  { %1217 = vmatpush3.msra.mxu1 %v88_v3  ;;  %1183 = vmatprep.subr.mxu0 %v71_v4  ;;  %v86_v11 = vld [vmem:[#allocation5 + $0x168] sm:$0xff]  ;;  %v69_v12 = vld [vmem:[#allocation5 + $0xe0] sm:$0xff]  ;;  %v68_v16 = vld [vmem:[#allocation5 + $0xd8] sm:$0xff]  ;;  %v1631_v56 = vsub.s32 1, %v1628_v47  ;;  %v1636_v60 = vsub.s32 3, %v1628_v47  ;;  %v1639_v63 = vsub.s32 0, %v1628_v47  ;;  %p1582_p12 = scmp.lt.s32.totalorder %s1580_s22, %s1576_s21 }
  0x1f   :  { %1218 = vmatprep.subr.mxu1 %v103_v5  ;;  %1184 = vmatpush3.msra.mxu0 %v55_v6  ;;  %v101_v13 = vld [vmem:[#allocation5 + $0x1e0] sm:$0xff]  ;;  %v100_v17 = vld [vmem:[#allocation5 + $0x1d8] sm:$0xff]  ;;  %v67_v20 = vld [vmem:[#allocation5 + $0xd0] sm:$0xff]  ;;  %v1642_v0 = vsub.s32 2, %v1628_v47 }
  0x20   :  { %1219 = vmatpush3.msra.mxu1 %v87_v7  ;;  %1185 = vmatprep.subr.mxu0 %v70_v8  ;;  %v53_v14 = vld [vmem:[#allocation5 + $0x60] sm:$0xff]  ;;  %v52_v18 = vld [vmem:[#allocation5 + $0x58] sm:$0xff]  ;;  %v99_v21 = vld [vmem:[#allocation5 + $0x1d0] sm:$0xff]  ;;  %p1583_p13 = por %p1582_p12, %p1581_p11 }
  0x21   :  { %1220 = vmatprep.subr.mxu1 %v102_v9  ;;  %v85_v15 = vld [vmem:[#allocation5 + $0x160] sm:$0xff]  ;;  %1186 = vmatpush3.msra.mxu0 %v54_v10  ;;  %v84_v19 = vld [vmem:[#allocation5 + $0x158] sm:$0xff]  ;;  %v51_v22 = vld [vmem:[#allocation5 + $0x50] sm:$0xff] }
  0x22   :  { %1221 = vmatpush3.msra.mxu1 %v86_v11  ;;  %1187 = vmatprep.subr.mxu0 %v69_v12  ;;  %v83_v23 = vld [vmem:[#allocation5 + $0x150] sm:$0xff]  ;;  %v66_v24 = vld [vmem:[#allocation5 + $0xc8] sm:$0xff]  ;;  %v65_v28 = vld [vmem:[#allocation5 + $0xc0] sm:$0xff]  ;;  %p1584_p0 = pnand %p1583_p13, %p1577_p10 }
  0x23   :  { %1222 = vmatprep.subr.mxu1 %v101_v13  ;;  %1188 = vmatpush3.msra.mxu0 %v53_v14  ;;  %v98_v25 = vld [vmem:[#allocation5 + $0x1c8] sm:$0xff]  ;;  %v97_v29 = vld [vmem:[#allocation5 + $0x1c0] sm:$0xff]  ;;  %v64_v32 = vld [vmem:[#allocation5 + $0xb8] sm:$0xff] }
  0x24   :  { %1223 = vmatpush3.msra.mxu1 %v85_v15  ;;  %1189 = vmatprep.subr.mxu0 %v68_v16  ;;  %v50_v26 = vld [vmem:[#allocation5 + $0x48] sm:$0xff]  ;;  %v49_v30 = vld [vmem:[#allocation5 + $0x40] sm:$0xff]  ;;  %v96_v33 = vld [vmem:[#allocation5 + $0x1b8] sm:$0xff] }
  0x25   :  { %1224 = vmatprep.subr.mxu1 %v100_v17  ;;  %1190 = vmatpush3.msra.mxu0 %v52_v18  ;;  %v82_v27 = vld [vmem:[#allocation5 + $0x148] sm:$0xff]  ;;  %v81_v31 = vld [vmem:[#allocation5 + $0x140] sm:$0xff]  ;;  %v48_v34 = vld [vmem:[#allocation5 + $0x38] sm:$0xff] }
  0x26   :  { %1225 = vmatpush3.msra.mxu1 %v84_v19  ;;  %1191 = vmatprep.subr.mxu0 %v67_v20  ;;  %v80_v35 = vld [vmem:[#allocation5 + $0x138] sm:$0xff]  ;;  %v63_v36 = vld [vmem:[#allocation5 + $0xb0] sm:$0xff]  ;;  %v62_v41 = vld [vmem:[#allocation5 + $0xa8] sm:$0xff] }
  0x27   :  { %1226 = vmatprep.subr.mxu1 %v99_v21  ;;  %1192 = vmatpush3.msra.mxu0 %v51_v22  ;;  %v95_v37 = vld [vmem:[#allocation5 + $0x1b0] sm:$0xff]  ;;  %v94_v42 = vld [vmem:[#allocation5 + $0x1a8] sm:$0xff]  ;;  %v61_v45 = vld [vmem:[#allocation5 + $0xa0] sm:$0xff] }
  0x28   :  { %1227 = vmatpush3.msra.mxu1 %v83_v23  ;;  %1193 = vmatprep.subr.mxu0 %v66_v24  ;;  %v47_v39 = vld [vmem:[#allocation5 + $0x30] sm:$0xff]  ;;  %v46_v43 = vld [vmem:[#allocation5 + $0x28] sm:$0xff]  ;;  %v93_v46 = vld [vmem:[#allocation5 + $0x1a0] sm:$0xff] }
  0x29   :  { %1228 = vmatprep.subr.mxu1 %v98_v25  ;;  %1194 = vmatpush3.msra.mxu0 %v50_v26  ;;  %v79_v40 = vld [vmem:[#allocation5 + $0x130] sm:$0xff]  ;;  %v78_v44 = vld [vmem:[#allocation5 + $0x128] sm:$0xff]  ;;  %v45_v48 = vld [vmem:[#allocation5 + $0x20] sm:$0xff] }
  0x2a   :  { %1229 = vmatpush3.msra.mxu1 %v82_v27  ;;  %1195 = vmatprep.subr.mxu0 %v65_v28  ;;  %v77_v49 = vld [vmem:[#allocation5 + $0x120] sm:$0xff]  ;;  %v60_v50 = vld [vmem:[#allocation5 + $0x98] sm:$0xff]  ;;  %v59_v54 = vld [vmem:[#allocation5 + $0x90] sm:$0xff] }
  0x2b   :  { %1230 = vmatprep.subr.mxu1 %v97_v29  ;;  %1196 = vmatpush3.msra.mxu0 %v49_v30  ;;  %v92_v51 = vld [vmem:[#allocation5 + $0x198] sm:$0xff]  ;;  %v91_v55 = vld [vmem:[#allocation5 + $0x190] sm:$0xff]  ;;  %v58_v61 = vld [vmem:[#allocation5 + $0x88] sm:$0xff] }
  0x2c   :  { %1231 = vmatpush3.msra.mxu1 %v81_v31  ;;  %1197 = vmatprep.subr.mxu0 %v64_v32  ;;  %v44_v52 = vld [vmem:[#allocation5 + $0x18] sm:$0xff]  ;;  %v43_v57 = vld [vmem:[#allocation5 + $0x10] sm:$0xff]  ;;  %v90_v62 = vld [vmem:[#allocation5 + $0x188] sm:$0xff] }
  0x2d   :  { %1232 = vmatprep.subr.mxu1 %v96_v33  ;;  %1198 = vmatpush3.msra.mxu0 %v48_v34  ;;  %v76_v53 = vld [vmem:[#allocation5 + $0x118] sm:$0xff]  ;;  %v75_v58 = vld [vmem:[#allocation5 + $0x110] sm:$0xff]  ;;  %v42_v1 = vld [vmem:[#allocation5 + $0x8] sm:$0xff] }
  0x2e   :  { %1233 = vmatpush3.msra.mxu1 %v80_v35  ;;  %1199 = vmatprep.subr.mxu0 %v63_v36  ;;  %v1633_v59 = vld [vmem:[#allocation2] sm:$0xff]  ;;  %v57_v3 = vld [vmem:[#allocation5 + $0x80] sm:$0xff]  ;;  %v136_v11 = vld [vmem:[#allocation5 + $0x2f8] sm:$0xff] }
  0x2f   :  { %1234 = vmatprep.subr.mxu1 %v95_v37  ;;  %1200 = vmatpush3.msra.mxu0 %v47_v39  ;;  %v74_v2 = vld [vmem:[#allocation5 + $0x108] sm:$0xff]  ;;  %v89_v4 = vld [vmem:[#allocation5 + $0x180] sm:$0xff]  ;;  %v371_v5 = vrot.slane %v1633_v59, %v1631_v56  ;;  %v379_v7 = vrot.slane %v1633_v59, %v1636_v60  ;;  %v367_v9 = vrot.slane %v1633_v59, %v1639_v63  ;;  %v168_v12 = vld [vmem:[#allocation5 + $0x3f8] sm:$0xff] }
  0x30   :  { %1235 = vmatpush3.msra.mxu1 %v79_v40  ;;  %1201 = vmatprep.subr.mxu0 %v62_v41  ;;  %v41_v6 = vld [vmem:[#allocation5] sm:$0xff]  ;;  %v375_v10 = vrot.slane %v1633_v59, %v1642_v0  ;;  %v120_v13 = vld [vmem:[#allocation5 + $0x278] sm:$0xff]  ;;  %v135_v15 = vld [vmem:[#allocation5 + $0x2f0] sm:$0xff] }
  0x31   :  { %1236 = vmatprep.subr.mxu1 %v94_v42  ;;  %1202 = vmatpush3.msra.mxu0 %v46_v43  ;;  %v73_v8 = vld [vmem:[#allocation5 + $0x100] sm:$0xff]  ;;  %v152_v14 = vld [vmem:[#allocation5 + $0x378] sm:$0xff]  ;;  %v167_v16 = vld [vmem:[#allocation5 + $0x3f0] sm:$0xff] }
  0x32   :  { %1237 = vmatpush3.msra.mxu1 %v78_v44  ;;  %1203 = vmatprep.subr.mxu0 %v61_v45  ;;  %v119_v17 = vld [vmem:[#allocation5 + $0x270] sm:$0xff]  ;;  %v134_v19 = vld [vmem:[#allocation5 + $0x2e8] sm:$0xff]  ;;  %v133_v23 = vld [vmem:[#allocation5 + $0x2e0] sm:$0xff] }
  0x33   :  { %1238 = vmatprep.subr.mxu1 %v93_v46  ;;  %1204 = vmatpush3.msra.mxu0 %v45_v48  ;;  %v151_v18 = vld [vmem:[#allocation5 + $0x370] sm:$0xff]  ;;  %v166_v20 = vld [vmem:[#allocation5 + $0x3e8] sm:$0xff]  ;;  %v165_v24 = vld [vmem:[#allocation5 + $0x3e0] sm:$0xff] }
  0x34   :  { %1239 = vmatpush3.msra.mxu1 %v77_v49  ;;  %1205 = vmatprep.subr.mxu0 %v60_v50  ;;  %v118_v21 = vld [vmem:[#allocation5 + $0x268] sm:$0xff]  ;;  %v117_v25 = vld [vmem:[#allocation5 + $0x260] sm:$0xff]  ;;  %v132_v27 = vld [vmem:[#allocation5 + $0x2d8] sm:$0xff] }
  0x35   :  { %1240 = vmatprep.subr.mxu1 %v92_v51  ;;  %1206 = vmatpush3.msra.mxu0 %v44_v52  ;;  %v150_v22 = vld [vmem:[#allocation5 + $0x368] sm:$0xff]  ;;  %v149_v26 = vld [vmem:[#allocation5 + $0x360] sm:$0xff]  ;;  %v164_v28 = vld [vmem:[#allocation5 + $0x3d8] sm:$0xff] }
  0x36   :  { %1241 = vmatpush3.msra.mxu1 %v76_v53  ;;  %1207 = vmatprep.subr.mxu0 %v59_v54  ;;  %v116_v29 = vld [vmem:[#allocation5 + $0x258] sm:$0xff]  ;;  %v131_v31 = vld [vmem:[#allocation5 + $0x2d0] sm:$0xff]  ;;  %v130_v35 = vld [vmem:[#allocation5 + $0x2c8] sm:$0xff] }
  0x37   :  { %1242 = vmatprep.subr.mxu1 %v91_v55  ;;  %1208 = vmatpush3.msra.mxu0 %v43_v57  ;;  %v148_v30 = vld [vmem:[#allocation5 + $0x358] sm:$0xff]  ;;  %v163_v32 = vld [vmem:[#allocation5 + $0x3d0] sm:$0xff]  ;;  %v162_v36 = vld [vmem:[#allocation5 + $0x3c8] sm:$0xff] }
  0x38   :  { %1243 = vmatpush3.msra.mxu1 %v75_v58  ;;  %1209 = vmatprep.subr.mxu0 %v58_v61  ;;  %v115_v33 = vld [vmem:[#allocation5 + $0x250] sm:$0xff]  ;;  %v114_v37 = vld [vmem:[#allocation5 + $0x248] sm:$0xff]  ;;  %v129_v39 = vld [vmem:[#allocation5 + $0x2c0] sm:$0xff] }
  0x39   :  { %1244 = vmatprep.subr.mxu1 %v90_v62  ;;  %1210 = vmatpush3.msra.mxu0 %v42_v1  ;;  %v147_v34 = vld [vmem:[#allocation5 + $0x350] sm:$0xff]  ;;  %v146_v38 = vld [vmem:[#allocation5 + $0x348] sm:$0xff]  ;;  %v161_v40 = vld [vmem:[#allocation5 + $0x3c0] sm:$0xff] }
  0x3a   :  { %1245 = vmatpush3.msra.mxu1 %v74_v2  ;;  %1211 = vmatprep.subr.mxu0 %v57_v3  ;;  %v113_v41 = vld [vmem:[#allocation5 + $0x240] sm:$0xff]  ;;  %v128_v43 = vld [vmem:[#allocation5 + $0x2b8] sm:$0xff]  ;;  %v127_v48 = vld [vmem:[#allocation5 + $0x2b0] sm:$0xff] }
  0x3b   :  { %1246 = vmatprep.subr.mxu1 %v89_v4  ;;  %1212 = vmatpush3.msra.mxu0 %v41_v6  ;;  %v145_v42 = vld [vmem:[#allocation5 + $0x340] sm:$0xff]  ;;  %v160_v44 = vld [vmem:[#allocation5 + $0x3b8] sm:$0xff]  ;;  %v159_v49 = vld [vmem:[#allocation5 + $0x3b0] sm:$0xff] }
  0x3c   :  { %528 = vmatprep.mubr.f32.mxu0 %v371_v5  ;;  %1247 = vmatpush3.msra.mxu1 %v73_v8  ;;  %v112_v45 = vld [vmem:[#allocation5 + $0x238] sm:$0xff]  ;;  %v111_v50 = vld [vmem:[#allocation5 + $0x230] sm:$0xff]  ;;  %v126_v52 = vld [vmem:[#allocation5 + $0x2a8] sm:$0xff] }
  0x3d   :  { %598 = vmatprep.mubr.f32.mxu1 %v379_v7  ;;  %529 = vmatmul.mubr.f32.vlgmr.msra.gmra.mxu0 %v367_v9  ;;  %v144_v46 = vld [vmem:[#allocation5 + $0x338] sm:$0xff]  ;;  %v143_v51 = vld [vmem:[#allocation5 + $0x330] sm:$0xff]  ;;  %v158_v53 = vld [vmem:[#allocation5 + $0x3a8] sm:$0xff]  ;;  %v386_v7 = vsub.s32 5, %v1628_v47 }
  0x3e   :  { %599 = vmatmul.mubr.f32.vlgmr.msra.gmra.mxu1 %v375_v10  ;;  %1251 = vmatprep.subr.mxu0 %v136_v11  ;;  %v110_v54 = vld [vmem:[#allocation5 + $0x228] sm:$0xff]  ;;  %v125_v57 = vld [vmem:[#allocation5 + $0x2a0] sm:$0xff]  ;;  %v124_v1 = vld [vmem:[#allocation5 + $0x298] sm:$0xff]  ;;  %v382_v10 = vsub.s32 4, %v1628_v47 }
  0x3f   :  { %1286 = vmatprep.subr.mxu1 %v168_v12  ;;  %1252 = vmatpush3.msra.mxu0 %v120_v13  ;;  %v142_v55 = vld [vmem:[#allocation5 + $0x328] sm:$0xff]  ;;  %v157_v58 = vld [vmem:[#allocation5 + $0x3a0] sm:$0xff]  ;;  %v156_v2 = vld [vmem:[#allocation5 + $0x398] sm:$0xff]  ;;  %v394_v13 = vsub.s32 7, %v1628_v47 }
  0x40   :  { %1287 = vmatpush3.msra.mxu1 %v152_v14  ;;  %1253 = vmatprep.subr.mxu0 %v135_v15  ;;  %v109_v61 = vld [vmem:[#allocation5 + $0x220] sm:$0xff]  ;;  %v108_v3 = vld [vmem:[#allocation5 + $0x218] sm:$0xff]  ;;  %v123_v5 = vld [vmem:[#allocation5 + $0x290] sm:$0xff] }
  0x41   :  { %1288 = vmatprep.subr.mxu1 %v167_v16  ;;  %1254 = vmatpush3.msra.mxu0 %v119_v17  ;;  %v141_v62 = vld [vmem:[#allocation5 + $0x320] sm:$0xff]  ;;  %v140_v4 = vld [vmem:[#allocation5 + $0x318] sm:$0xff]  ;;  %v155_v6 = vld [vmem:[#allocation5 + $0x390] sm:$0xff]  ;;  %v390_v16 = vsub.s32 6, %v1628_v47 }
  0x42   :  { %1289 = vmatpush3.msra.mxu1 %v151_v18  ;;  %1255 = vmatprep.subr.mxu0 %v134_v19  ;;  %v107_v8 = vld [vmem:[#allocation5 + $0x210] sm:$0xff]  ;;  %v122_v11 = vld [vmem:[#allocation5 + $0x288] sm:$0xff]  ;;  %v121_v17 = vld [vmem:[#allocation5 + $0x280] sm:$0xff]  ;;  %v387_v19 = vrot.slane %v1633_v59, %v386_v7 }
  0x43   :  { %1290 = vmatprep.subr.mxu1 %v166_v20  ;;  %1256 = vmatpush3.msra.mxu0 %v118_v21  ;;  %v139_v9 = vld [vmem:[#allocation5 + $0x310] sm:$0xff]  ;;  %v154_v12 = vld [vmem:[#allocation5 + $0x388] sm:$0xff]  ;;  %v153_v18 = vld [vmem:[#allocation5 + $0x380] sm:$0xff]  ;;  %v383_v21 = vrot.slane %v1633_v59, %v382_v10 }
  0x44   :  { %1291 = vmatpush3.msra.mxu1 %v150_v22  ;;  %1257 = vmatprep.subr.mxu0 %v133_v23  ;;  %v106_v14 = vld [vmem:[#allocation5 + $0x208] sm:$0xff]  ;;  %v105_v20 = vld [vmem:[#allocation5 + $0x200] sm:$0xff]  ;;  %v395_v23 = vrot.slane %v1633_v59, %v394_v13 }
  0x45   :  { %1292 = vmatprep.subr.mxu1 %v165_v24  ;;  %1258 = vmatpush3.msra.mxu0 %v117_v25  ;;  %v138_v15 = vld [vmem:[#allocation5 + $0x308] sm:$0xff]  ;;  %v137_v22 = vld [vmem:[#allocation5 + $0x300] sm:$0xff]  ;;  %v200_v24 = vld [vmem:[#allocation5 + $0x4f8] sm:$0xff]  ;;  %v391_v25 = vrot.slane %v1633_v59, %v390_v16 }
  0x46   :  { %1293 = vmatpush3.msra.mxu1 %v149_v26  ;;  %1259 = vmatprep.subr.mxu0 %v132_v27  ;;  %v232_v26 = vld [vmem:[#allocation5 + $0x5f8] sm:$0xff]  ;;  %v182_v59 = vld [vmem:[#allocation5 + $0x468] sm:$0xff] }
  0x47   :  { %1294 = vmatprep.subr.mxu1 %v164_v28  ;;  %1260 = vmatpush3.msra.mxu0 %v116_v29  ;;  %v184_v27 = vld [vmem:[#allocation5 + $0x478] sm:$0xff]  ;;  %v199_v29 = vld [vmem:[#allocation5 + $0x4f0] sm:$0xff]  ;;  %v326_v47 = vld [vmem:[#allocation5 + $0x8e8] sm:$0xff] }
  0x48   :  { %1295 = vmatpush3.msra.mxu1 %v148_v30  ;;  %1261 = vmatprep.subr.mxu0 %v131_v31  ;;  %v216_v28 = vld [vmem:[#allocation5 + $0x578] sm:$0xff]  ;;  %v231_v30 = vld [vmem:[#allocation5 + $0x5f0] sm:$0xff] }
  0x49   :  { %1296 = vmatprep.subr.mxu1 %v163_v32  ;;  %1262 = vmatpush3.msra.mxu0 %v115_v33  ;;  %v183_v31 = vld [vmem:[#allocation5 + $0x470] sm:$0xff]  ;;  %v198_v33 = vld [vmem:[#allocation5 + $0x4e8] sm:$0xff] }
  0x4a   :  { %1297 = vmatpush3.msra.mxu1 %v147_v34  ;;  %1263 = vmatprep.subr.mxu0 %v130_v35  ;;  %v215_v32 = vld [vmem:[#allocation5 + $0x570] sm:$0xff]  ;;  %v230_v34 = vld [vmem:[#allocation5 + $0x5e8] sm:$0xff] }
  0x4b   :  { %1298 = vmatprep.subr.mxu1 %v162_v36  ;;  %1264 = vmatpush3.msra.mxu0 %v114_v37  ;;  %v214_v35 = vld [vmem:[#allocation5 + $0x568] sm:$0xff]  ;;  %v197_v36 = vld [vmem:[#allocation5 + $0x4e0] sm:$0xff] }
  0x4c   :  { %1299 = vmatpush3.msra.mxu1 %v146_v38  ;;  %1265 = vmatprep.subr.mxu0 %v129_v39  ;;  %v229_v37 = vld [vmem:[#allocation5 + $0x5e0] sm:$0xff] }
  0x4d   :  { %1300 = vmatprep.subr.mxu1 %v161_v40  ;;  %1266 = vmatpush3.msra.mxu0 %v113_v41  ;;  %v181_v38 = vld [vmem:[#allocation5 + $0x460] sm:$0xff]  ;;  %v196_v40 = vld [vmem:[#allocation5 + $0x4d8] sm:$0xff] }
  0x4e   :  { %1301 = vmatpush3.msra.mxu1 %v145_v42  ;;  %1267 = vmatprep.subr.mxu0 %v128_v43  ;;  %v213_v39 = vld [vmem:[#allocation5 + $0x560] sm:$0xff]  ;;  %v228_v41 = vld [vmem:[#allocation5 + $0x5d8] sm:$0xff] }
  0x4f   :  { %1302 = vmatprep.subr.mxu1 %v160_v44  ;;  %1268 = vmatpush3.msra.mxu0 %v112_v45  ;;  %v180_v42 = vld [vmem:[#allocation5 + $0x458] sm:$0xff]  ;;  %v195_v44 = vld [vmem:[#allocation5 + $0x4d0] sm:$0xff] }
  0x50   :  { %1303 = vmatpush3.msra.mxu1 %v144_v46  ;;  %1269 = vmatprep.subr.mxu0 %v127_v48  ;;  %v212_v43 = vld [vmem:[#allocation5 + $0x558] sm:$0xff]  ;;  %v227_v45 = vld [vmem:[#allocation5 + $0x5d0] sm:$0xff] }
  0x51   :  { %1304 = vmatprep.subr.mxu1 %v159_v49  ;;  %1270 = vmatpush3.msra.mxu0 %v111_v50  ;;  %v179_v46 = vld [vmem:[#allocation5 + $0x450] sm:$0xff]  ;;  %v194_v49 = vld [vmem:[#allocation5 + $0x4c8] sm:$0xff] }
  0x52   :  { %1305 = vmatpush3.msra.mxu1 %v143_v51  ;;  %1271 = vmatprep.subr.mxu0 %v126_v52  ;;  %v211_v48 = vld [vmem:[#allocation5 + $0x550] sm:$0xff]  ;;  %v226_v50 = vld [vmem:[#allocation5 + $0x5c8] sm:$0xff] }
  0x53   :  { %1306 = vmatprep.subr.mxu1 %v158_v53  ;;  %1272 = vmatpush3.msra.mxu0 %v110_v54  ;;  %v178_v51 = vld [vmem:[#allocation5 + $0x448] sm:$0xff]  ;;  %v193_v53 = vld [vmem:[#allocation5 + $0x4c0] sm:$0xff] }
  0x54   :  { %1307 = vmatpush3.msra.mxu1 %v142_v55  ;;  %1273 = vmatprep.subr.mxu0 %v125_v57  ;;  %v210_v52 = vld [vmem:[#allocation5 + $0x548] sm:$0xff]  ;;  %v225_v54 = vld [vmem:[#allocation5 + $0x5c0] sm:$0xff] }
  0x55   :  { %1308 = vmatprep.subr.mxu1 %v157_v58  ;;  %1274 = vmatpush3.msra.mxu0 %v109_v61  ;;  %v177_v55 = vld [vmem:[#allocation5 + $0x440] sm:$0xff]  ;;  %v192_v58 = vld [vmem:[#allocation5 + $0x4b8] sm:$0xff] }
  0x56   :  { %1309 = vmatpush3.msra.mxu1 %v141_v62  ;;  %1275 = vmatprep.subr.mxu0 %v124_v1  ;;  %v209_v57 = vld [vmem:[#allocation5 + $0x540] sm:$0xff]  ;;  %v224_v61 = vld [vmem:[#allocation5 + $0x5b8] sm:$0xff] }
  0x57   :  { %1310 = vmatprep.subr.mxu1 %v156_v2  ;;  %1276 = vmatpush3.msra.mxu0 %v108_v3  ;;  %v176_v62 = vld [vmem:[#allocation5 + $0x438] sm:$0xff]  ;;  %v191_v2 = vld [vmem:[#allocation5 + $0x4b0] sm:$0xff] }
  0x58   :  { %1311 = vmatpush3.msra.mxu1 %v140_v4  ;;  %1277 = vmatprep.subr.mxu0 %v123_v5  ;;  %v208_v1 = vld [vmem:[#allocation5 + $0x538] sm:$0xff]  ;;  %v223_v3 = vld [vmem:[#allocation5 + $0x5b0] sm:$0xff] }
  0x59   :  { %1312 = vmatprep.subr.mxu1 %v155_v6  ;;  %1278 = vmatpush3.msra.mxu0 %v107_v8  ;;  %v175_v4 = vld [vmem:[#allocation5 + $0x430] sm:$0xff]  ;;  %v190_v6 = vld [vmem:[#allocation5 + $0x4a8] sm:$0xff] }
  0x5a   :  { %1313 = vmatpush3.msra.mxu1 %v139_v9  ;;  %1279 = vmatprep.subr.mxu0 %v122_v11  ;;  %v207_v5 = vld [vmem:[#allocation5 + $0x530] sm:$0xff]  ;;  %v222_v8 = vld [vmem:[#allocation5 + $0x5a8] sm:$0xff] }
  0x5b   :  { %1314 = vmatprep.subr.mxu1 %v154_v12  ;;  %1280 = vmatpush3.msra.mxu0 %v106_v14  ;;  %v174_v9 = vld [vmem:[#allocation5 + $0x428] sm:$0xff]  ;;  %v189_v12 = vld [vmem:[#allocation5 + $0x4a0] sm:$0xff] }
  0x5c   :  { %1315 = vmatpush3.msra.mxu1 %v138_v15  ;;  %1281 = vmatprep.subr.mxu0 %v121_v17  ;;  %v206_v11 = vld [vmem:[#allocation5 + $0x528] sm:$0xff]  ;;  %v221_v14 = vld [vmem:[#allocation5 + $0x5a0] sm:$0xff] }
  0x5d   :  { %1316 = vmatprep.subr.mxu1 %v153_v18  ;;  %1282 = vmatpush3.msra.mxu0 %v105_v20  ;;  %v173_v15 = vld [vmem:[#allocation5 + $0x420] sm:$0xff]  ;;  %v188_v18 = vld [vmem:[#allocation5 + $0x498] sm:$0xff] }
  0x5e   :  { %668 = vmatprep.mubr.f32.mxu0 %v387_v19  ;;  %1317 = vmatpush3.msra.mxu1 %v137_v22  ;;  %v205_v17 = vld [vmem:[#allocation5 + $0x520] sm:$0xff]  ;;  %v220_v19 = vld [vmem:[#allocation5 + $0x598] sm:$0xff]  ;;  %v187_v22 = vld [vmem:[#allocation5 + $0x490] sm:$0xff] }
  0x5f   :  { %669 = vmatmul.mubr.f32.vlgmr.msra.gmra.mxu0 %v383_v21  ;;  %738 = vmatprep.mubr.f32.mxu1 %v395_v23  ;;  %v172_v20 = vld [vmem:[#allocation5 + $0x418] sm:$0xff]  ;;  %v219_v23 = vld [vmem:[#allocation5 + $0x590] sm:$0xff] }
  0x60   :  { %1321 = vmatprep.subr.mxu0 %v200_v24  ;;  %1356 = vmatprep.subr.mxu1 %v232_v26  ;;  %v204_v21 = vld [vmem:[#allocation5 + $0x518] sm:$0xff]  ;;  %v171_v24 = vld [vmem:[#allocation5 + $0x410] sm:$0xff] }
  0x61   :  { %739 = vmatmul.mubr.f32.vlgmr.msra.gmra.mxu1 %v391_v25  ;;  %1322 = vmatpush3.msra.mxu0 %v184_v27  ;;  %v203_v25 = vld [vmem:[#allocation5 + $0x510] sm:$0xff]  ;;  %v186_v27 = vld [vmem:[#allocation5 + $0x488] sm:$0xff] }
  0x62   :  { %1357 = vmatpush3.msra.mxu1 %v216_v28  ;;  %1323 = vmatprep.subr.mxu0 %v199_v29  ;;  %v1668_v26 = vld [vmem:[#allocation2 + $0x8] sm:$0xff]  ;;  %v218_v28 = vld [vmem:[#allocation5 + $0x588] sm:$0xff] }
  0x63   :  { %1358 = vmatprep.subr.mxu1 %v231_v30  ;;  %1324 = vmatpush3.msra.mxu0 %v183_v31  ;;  %v170_v29 = vld [vmem:[#allocation5 + $0x408] sm:$0xff]  ;;  %v185_v31 = vld [vmem:[#allocation5 + $0x480] sm:$0xff] }
  0x64   :  { %1359 = vmatpush3.msra.mxu1 %v215_v32  ;;  %1325 = vmatprep.subr.mxu0 %v198_v33  ;;  %v202_v30 = vld [vmem:[#allocation5 + $0x508] sm:$0xff]  ;;  %v217_v32 = vld [vmem:[#allocation5 + $0x580] sm:$0xff]  ;;  %v403_v33 = vrot.slane %v1668_v26, %v1631_v56 }
  0x65   :  { %1360 = vmatprep.subr.mxu1 %v230_v34  ;;  %1326 = vmatpush3.msra.mxu0 %v182_v59  ;;  %v169_v34 = vld [vmem:[#allocation5 + $0x400] sm:$0xff]  ;;  %v399_v59 = vrot.slane %v1668_v26, %v1639_v63 }
  0x66   :  { %1361 = vmatpush3.msra.mxu1 %v214_v35  ;;  %1327 = vmatprep.subr.mxu0 %v197_v36  ;;  %v201_v35 = vld [vmem:[#allocation5 + $0x500] sm:$0xff]  ;;  %v411_v36 = vrot.slane %v1668_v26, %v1636_v60 }
  0x67   :  { %1362 = vmatprep.subr.mxu1 %v229_v37  ;;  %1328 = vmatpush3.msra.mxu0 %v181_v38  ;;  %v264_v37 = vld [vmem:[#allocation5 + $0x6f8] sm:$0xff]  ;;  %v407_v38 = vrot.slane %v1668_v26, %v1642_v0 }
  0x68   :  { %1363 = vmatpush3.msra.mxu1 %v213_v39  ;;  %1329 = vmatprep.subr.mxu0 %v196_v40  ;;  %v296_v39 = vld [vmem:[#allocation5 + $0x7f8] sm:$0xff] }
  0x69   :  { %1364 = vmatprep.subr.mxu1 %v228_v41  ;;  %1330 = vmatpush3.msra.mxu0 %v180_v42  ;;  %v248_v40 = vld [vmem:[#allocation5 + $0x678] sm:$0xff]  ;;  %v263_v42 = vld [vmem:[#allocation5 + $0x6f0] sm:$0xff] }
  0x6a   :  { %1365 = vmatpush3.msra.mxu1 %v212_v43  ;;  %1331 = vmatprep.subr.mxu0 %v195_v44  ;;  %v280_v41 = vld [vmem:[#allocation5 + $0x778] sm:$0xff]  ;;  %v295_v43 = vld [vmem:[#allocation5 + $0x7f0] sm:$0xff] }
  0x6b   :  { %1366 = vmatprep.subr.mxu1 %v227_v45  ;;  %1332 = vmatpush3.msra.mxu0 %v179_v46  ;;  %v247_v44 = vld [vmem:[#allocation5 + $0x670] sm:$0xff]  ;;  %v262_v46 = vld [vmem:[#allocation5 + $0x6e8] sm:$0xff] }
  0x6c   :  { %1367 = vmatpush3.msra.mxu1 %v211_v48  ;;  %1333 = vmatprep.subr.mxu0 %v194_v49  ;;  %v279_v45 = vld [vmem:[#allocation5 + $0x770] sm:$0xff]  ;;  %v294_v48 = vld [vmem:[#allocation5 + $0x7e8] sm:$0xff] }
  0x6d   :  { %1368 = vmatprep.subr.mxu1 %v226_v50  ;;  %1334 = vmatpush3.msra.mxu0 %v178_v51  ;;  %v246_v49 = vld [vmem:[#allocation5 + $0x668] sm:$0xff]  ;;  %v261_v51 = vld [vmem:[#allocation5 + $0x6e0] sm:$0xff] }
  0x6e   :  { %1369 = vmatpush3.msra.mxu1 %v210_v52  ;;  %1335 = vmatprep.subr.mxu0 %v193_v53  ;;  %v278_v50 = vld [vmem:[#allocation5 + $0x768] sm:$0xff]  ;;  %v293_v52 = vld [vmem:[#allocation5 + $0x7e0] sm:$0xff] }
  0x6f   :  { %1370 = vmatprep.subr.mxu1 %v225_v54  ;;  %1336 = vmatpush3.msra.mxu0 %v177_v55  ;;  %v245_v53 = vld [vmem:[#allocation5 + $0x660] sm:$0xff]  ;;  %v260_v55 = vld [vmem:[#allocation5 + $0x6d8] sm:$0xff] }
  0x70   :  { %1371 = vmatpush3.msra.mxu1 %v209_v57  ;;  %1337 = vmatprep.subr.mxu0 %v192_v58  ;;  %v277_v54 = vld [vmem:[#allocation5 + $0x760] sm:$0xff]  ;;  %v292_v57 = vld [vmem:[#allocation5 + $0x7d8] sm:$0xff] }
  0x71   :  { %1372 = vmatprep.subr.mxu1 %v224_v61  ;;  %1338 = vmatpush3.msra.mxu0 %v176_v62  ;;  %v244_v58 = vld [vmem:[#allocation5 + $0x658] sm:$0xff]  ;;  %v259_v62 = vld [vmem:[#allocation5 + $0x6d0] sm:$0xff] }
  0x72   :  { %1373 = vmatpush3.msra.mxu1 %v208_v1  ;;  %1339 = vmatprep.subr.mxu0 %v191_v2  ;;  %v276_v61 = vld [vmem:[#allocation5 + $0x758] sm:$0xff]  ;;  %v291_v1 = vld [vmem:[#allocation5 + $0x7d0] sm:$0xff] }
  0x73   :  { %1374 = vmatprep.subr.mxu1 %v223_v3  ;;  %1340 = vmatpush3.msra.mxu0 %v175_v4  ;;  %v243_v2 = vld [vmem:[#allocation5 + $0x650] sm:$0xff]  ;;  %v258_v4 = vld [vmem:[#allocation5 + $0x6c8] sm:$0xff] }
  0x74   :  { %1375 = vmatpush3.msra.mxu1 %v207_v5  ;;  %1341 = vmatprep.subr.mxu0 %v190_v6  ;;  %v275_v3 = vld [vmem:[#allocation5 + $0x750] sm:$0xff]  ;;  %v290_v5 = vld [vmem:[#allocation5 + $0x7c8] sm:$0xff] }
  0x75   :  { %1376 = vmatprep.subr.mxu1 %v222_v8  ;;  %1342 = vmatpush3.msra.mxu0 %v174_v9  ;;  %v242_v6 = vld [vmem:[#allocation5 + $0x648] sm:$0xff]  ;;  %v257_v9 = vld [vmem:[#allocation5 + $0x6c0] sm:$0xff] }
  0x76   :  { %1377 = vmatpush3.msra.mxu1 %v206_v11  ;;  %1343 = vmatprep.subr.mxu0 %v189_v12  ;;  %v274_v8 = vld [vmem:[#allocation5 + $0x748] sm:$0xff]  ;;  %v289_v11 = vld [vmem:[#allocation5 + $0x7c0] sm:$0xff] }
  0x77   :  { %1378 = vmatprep.subr.mxu1 %v221_v14  ;;  %1344 = vmatpush3.msra.mxu0 %v173_v15  ;;  %v241_v12 = vld [vmem:[#allocation5 + $0x640] sm:$0xff]  ;;  %v256_v15 = vld [vmem:[#allocation5 + $0x6b8] sm:$0xff] }
  0x78   :  { %1379 = vmatpush3.msra.mxu1 %v205_v17  ;;  %1345 = vmatprep.subr.mxu0 %v188_v18  ;;  %v273_v14 = vld [vmem:[#allocation5 + $0x740] sm:$0xff]  ;;  %v288_v17 = vld [vmem:[#allocation5 + $0x7b8] sm:$0xff] }
  0x79   :  { %1380 = vmatprep.subr.mxu1 %v220_v19  ;;  %1346 = vmatpush3.msra.mxu0 %v172_v20  ;;  %v240_v18 = vld [vmem:[#allocation5 + $0x638] sm:$0xff]  ;;  %v255_v20 = vld [vmem:[#allocation5 + $0x6b0] sm:$0xff] }
  0x7a   :  { %1381 = vmatpush3.msra.mxu1 %v204_v21  ;;  %1347 = vmatprep.subr.mxu0 %v187_v22  ;;  %v272_v19 = vld [vmem:[#allocation5 + $0x738] sm:$0xff]  ;;  %v287_v21 = vld [vmem:[#allocation5 + $0x7b0] sm:$0xff] }
  0x7b   :  { %1382 = vmatprep.subr.mxu1 %v219_v23  ;;  %1348 = vmatpush3.msra.mxu0 %v171_v24  ;;  %v239_v22 = vld [vmem:[#allocation5 + $0x630] sm:$0xff]  ;;  %v254_v24 = vld [vmem:[#allocation5 + $0x6a8] sm:$0xff] }
  0x7c   :  { %1383 = vmatpush3.msra.mxu1 %v203_v25  ;;  %1349 = vmatprep.subr.mxu0 %v186_v27  ;;  %v271_v23 = vld [vmem:[#allocation5 + $0x730] sm:$0xff]  ;;  %v286_v25 = vld [vmem:[#allocation5 + $0x7a8] sm:$0xff] }
  0x7d   :  { %1384 = vmatprep.subr.mxu1 %v218_v28  ;;  %1350 = vmatpush3.msra.mxu0 %v170_v29  ;;  %v238_v27 = vld [vmem:[#allocation5 + $0x628] sm:$0xff]  ;;  %v253_v29 = vld [vmem:[#allocation5 + $0x6a0] sm:$0xff] }
  0x7e   :  { %1385 = vmatpush3.msra.mxu1 %v202_v30  ;;  %1351 = vmatprep.subr.mxu0 %v185_v31  ;;  %v270_v28 = vld [vmem:[#allocation5 + $0x728] sm:$0xff]  ;;  %v285_v30 = vld [vmem:[#allocation5 + $0x7a0] sm:$0xff] }
  0x7f   :  { %1386 = vmatprep.subr.mxu1 %v217_v32  ;;  %1352 = vmatpush3.msra.mxu0 %v169_v34  ;;  %v237_v31 = vld [vmem:[#allocation5 + $0x620] sm:$0xff]  ;;  %v284_v34 = vld [vmem:[#allocation5 + $0x798] sm:$0xff] }
  0x80   :  { %808 = vmatprep.mubr.f32.mxu0 %v403_v33  ;;  %1387 = vmatpush3.msra.mxu1 %v201_v35  ;;  %v269_v32 = vld [vmem:[#allocation5 + $0x720] sm:$0xff]  ;;  %v252_v33 = vld [vmem:[#allocation5 + $0x698] sm:$0xff] }
  0x81   :  { %809 = vmatmul.mubr.f32.vlgmr.msra.gmra.mxu0 %v399_v59  ;;  %878 = vmatprep.mubr.f32.mxu1 %v411_v36  ;;  %v236_v59 = vld [vmem:[#allocation5 + $0x618] sm:$0xff]  ;;  %v251_v36 = vld [vmem:[#allocation5 + $0x690] sm:$0xff] }
  0x82   :  { %1391 = vmatprep.subr.mxu0 %v264_v37  ;;  %1426 = vmatprep.subr.mxu1 %v296_v39  ;;  %v268_v35 = vld [vmem:[#allocation5 + $0x718] sm:$0xff]  ;;  %v283_v37 = vld [vmem:[#allocation5 + $0x790] sm:$0xff] }
  0x83   :  { %879 = vmatmul.mubr.f32.vlgmr.msra.gmra.mxu1 %v407_v38  ;;  %1392 = vmatpush3.msra.mxu0 %v248_v40  ;;  %v235_v38 = vld [vmem:[#allocation5 + $0x610] sm:$0xff]  ;;  %v250_v40 = vld [vmem:[#allocation5 + $0x688] sm:$0xff] }
  0x84   :  { %1427 = vmatpush3.msra.mxu1 %v280_v41  ;;  %1393 = vmatprep.subr.mxu0 %v263_v42  ;;  %v267_v39 = vld [vmem:[#allocation5 + $0x710] sm:$0xff]  ;;  %v282_v41 = vld [vmem:[#allocation5 + $0x788] sm:$0xff] }
  0x85   :  { %1428 = vmatprep.subr.mxu1 %v295_v43  ;;  %1394 = vmatpush3.msra.mxu0 %v247_v44  ;;  %v234_v42 = vld [vmem:[#allocation5 + $0x608] sm:$0xff]  ;;  %v249_v44 = vld [vmem:[#allocation5 + $0x680] sm:$0xff] }
  0x86   :  { %1429 = vmatpush3.msra.mxu1 %v279_v45  ;;  %1395 = vmatprep.subr.mxu0 %v262_v46  ;;  %v266_v43 = vld [vmem:[#allocation5 + $0x708] sm:$0xff]  ;;  %v281_v45 = vld [vmem:[#allocation5 + $0x780] sm:$0xff]  ;;  %v419_v46 = vrot.slane %v1668_v26, %v386_v7  ;;  %v423_v7 = vrot.slane %v1668_v26, %v390_v16 }
  0x87   :  { %1430 = vmatprep.subr.mxu1 %v294_v48  ;;  %1396 = vmatpush3.msra.mxu0 %v246_v49  ;;  %v233_v48 = vld [vmem:[#allocation5 + $0x600] sm:$0xff]  ;;  %v415_v49 = vrot.slane %v1668_v26, %v382_v10  ;;  %v312_v10 = vld [vmem:[#allocation5 + $0x878] sm:$0xff]  ;;  %v310_v16 = vld [vmem:[#allocation5 + $0x868] sm:$0xff] }
  0x88   :  { %1431 = vmatpush3.msra.mxu1 %v278_v50  ;;  %1397 = vmatprep.subr.mxu0 %v261_v51  ;;  %v265_v50 = vld [vmem:[#allocation5 + $0x700] sm:$0xff]  ;;  %v427_v51 = vrot.slane %v1668_v26, %v394_v13  ;;  %v311_v13 = vld [vmem:[#allocation5 + $0x870] sm:$0xff]  ;;  %v342_v26 = vld [vmem:[#allocation5 + $0x968] sm:$0xff] }
  0x89   :  { %1432 = vmatprep.subr.mxu1 %v293_v52  ;;  %1398 = vmatpush3.msra.mxu0 %v245_v53  ;;  %v328_v52 = vld [vmem:[#allocation5 + $0x8f8] sm:$0xff] }
  0x8a   :  { %1433 = vmatpush3.msra.mxu1 %v277_v54  ;;  %1399 = vmatprep.subr.mxu0 %v260_v55  ;;  %v360_v53 = vld [vmem:[#allocation5 + $0x9f8] sm:$0xff]  ;;  %v327_v55 = vld [vmem:[#allocation5 + $0x8f0] sm:$0xff] }
  0x8b   :  { %1434 = vmatprep.subr.mxu1 %v292_v57  ;;  %1400 = vmatpush3.msra.mxu0 %v244_v58  ;;  %v344_v54 = vld [vmem:[#allocation5 + $0x978] sm:$0xff]  ;;  %v359_v57 = vld [vmem:[#allocation5 + $0x9f0] sm:$0xff] }
  0x8c   :  { %1435 = vmatpush3.msra.mxu1 %v276_v61  ;;  %1401 = vmatprep.subr.mxu0 %v259_v62  ;;  %v343_v58 = vld [vmem:[#allocation5 + $0x970] sm:$0xff]  ;;  %v358_v61 = vld [vmem:[#allocation5 + $0x9e8] sm:$0xff]  ;;  %v325_v62 = vld [vmem:[#allocation5 + $0x8e0] sm:$0xff] }
  0x8d   :  { %1436 = vmatprep.subr.mxu1 %v291_v1  ;;  %1402 = vmatpush3.msra.mxu0 %v243_v2  ;;  %v357_v1 = vld [vmem:[#allocation5 + $0x9e0] sm:$0xff] }
  0x8e   :  { %1437 = vmatpush3.msra.mxu1 %v275_v3  ;;  %1403 = vmatprep.subr.mxu0 %v258_v4  ;;  %v309_v2 = vld [vmem:[#allocation5 + $0x860] sm:$0xff]  ;;  %v324_v4 = vld [vmem:[#allocation5 + $0x8d8] sm:$0xff] }
  0x8f   :  { %1438 = vmatprep.subr.mxu1 %v290_v5  ;;  %1404 = vmatpush3.msra.mxu0 %v242_v6  ;;  %v341_v3 = vld [vmem:[#allocation5 + $0x960] sm:$0xff]  ;;  %v356_v5 = vld [vmem:[#allocation5 + $0x9d8] sm:$0xff] }
  0x90   :  { %1439 = vmatpush3.msra.mxu1 %v274_v8  ;;  %1405 = vmatprep.subr.mxu0 %v257_v9  ;;  %v308_v6 = vld [vmem:[#allocation5 + $0x858] sm:$0xff]  ;;  %v323_v9 = vld [vmem:[#allocation5 + $0x8d0] sm:$0xff] }
  0x91   :  { %1440 = vmatprep.subr.mxu1 %v289_v11  ;;  %1406 = vmatpush3.msra.mxu0 %v241_v12  ;;  %v340_v8 = vld [vmem:[#allocation5 + $0x958] sm:$0xff]  ;;  %v355_v11 = vld [vmem:[#allocation5 + $0x9d0] sm:$0xff] }
  0x92   :  { %1441 = vmatpush3.msra.mxu1 %v273_v14  ;;  %1407 = vmatprep.subr.mxu0 %v256_v15  ;;  %v307_v12 = vld [vmem:[#allocation5 + $0x850] sm:$0xff]  ;;  %v322_v15 = vld [vmem:[#allocation5 + $0x8c8] sm:$0xff] }
  0x93   :  { %1442 = vmatprep.subr.mxu1 %v288_v17  ;;  %1408 = vmatpush3.msra.mxu0 %v240_v18  ;;  %v339_v14 = vld [vmem:[#allocation5 + $0x950] sm:$0xff]  ;;  %v354_v17 = vld [vmem:[#allocation5 + $0x9c8] sm:$0xff] }
  0x94   :  { %1443 = vmatpush3.msra.mxu1 %v272_v19  ;;  %1409 = vmatprep.subr.mxu0 %v255_v20  ;;  %v306_v18 = vld [vmem:[#allocation5 + $0x848] sm:$0xff]  ;;  %v321_v20 = vld [vmem:[#allocation5 + $0x8c0] sm:$0xff] }
  0x95   :  { %1444 = vmatprep.subr.mxu1 %v287_v21  ;;  %1410 = vmatpush3.msra.mxu0 %v239_v22  ;;  %v338_v19 = vld [vmem:[#allocation5 + $0x948] sm:$0xff]  ;;  %v353_v21 = vld [vmem:[#allocation5 + $0x9c0] sm:$0xff] }
  0x96   :  { %1445 = vmatpush3.msra.mxu1 %v271_v23  ;;  %1411 = vmatprep.subr.mxu0 %v254_v24  ;;  %v305_v22 = vld [vmem:[#allocation5 + $0x840] sm:$0xff]  ;;  %v320_v24 = vld [vmem:[#allocation5 + $0x8b8] sm:$0xff] }
  0x97   :  { %1446 = vmatprep.subr.mxu1 %v286_v25  ;;  %1412 = vmatpush3.msra.mxu0 %v238_v27  ;;  %v337_v23 = vld [vmem:[#allocation5 + $0x940] sm:$0xff]  ;;  %v352_v25 = vld [vmem:[#allocation5 + $0x9b8] sm:$0xff] }
  0x98   :  { %1447 = vmatpush3.msra.mxu1 %v270_v28  ;;  %1413 = vmatprep.subr.mxu0 %v253_v29  ;;  %v304_v27 = vld [vmem:[#allocation5 + $0x838] sm:$0xff]  ;;  %v319_v29 = vld [vmem:[#allocation5 + $0x8b0] sm:$0xff] }
  0x99   :  { %1448 = vmatprep.subr.mxu1 %v285_v30  ;;  %1414 = vmatpush3.msra.mxu0 %v237_v31  ;;  %v336_v28 = vld [vmem:[#allocation5 + $0x938] sm:$0xff]  ;;  %v351_v30 = vld [vmem:[#allocation5 + $0x9b0] sm:$0xff] }
  0x9a   :  { %1449 = vmatpush3.msra.mxu1 %v269_v32  ;;  %1415 = vmatprep.subr.mxu0 %v252_v33  ;;  %v303_v31 = vld [vmem:[#allocation5 + $0x830] sm:$0xff]  ;;  %v318_v33 = vld [vmem:[#allocation5 + $0x8a8] sm:$0xff] }
  0x9b   :  { %1450 = vmatprep.subr.mxu1 %v284_v34  ;;  %1416 = vmatpush3.msra.mxu0 %v236_v59  ;;  %v335_v32 = vld [vmem:[#allocation5 + $0x930] sm:$0xff]  ;;  %v350_v34 = vld [vmem:[#allocation5 + $0x9a8] sm:$0xff] }
  0x9c   :  { %1451 = vmatpush3.msra.mxu1 %v268_v35  ;;  %1417 = vmatprep.subr.mxu0 %v251_v36  ;;  %v302_v59 = vld [vmem:[#allocation5 + $0x828] sm:$0xff]  ;;  %v317_v36 = vld [vmem:[#allocation5 + $0x8a0] sm:$0xff] }
  0x9d   :  { %1452 = vmatprep.subr.mxu1 %v283_v37  ;;  %1418 = vmatpush3.msra.mxu0 %v235_v38  ;;  %v334_v35 = vld [vmem:[#allocation5 + $0x928] sm:$0xff]  ;;  %v349_v37 = vld [vmem:[#allocation5 + $0x9a0] sm:$0xff] }
  0x9e   :  { %1453 = vmatpush3.msra.mxu1 %v267_v39  ;;  %1419 = vmatprep.subr.mxu0 %v250_v40  ;;  %v301_v38 = vld [vmem:[#allocation5 + $0x820] sm:$0xff]  ;;  %v316_v40 = vld [vmem:[#allocation5 + $0x898] sm:$0xff] }
  0x9f   :  { %1454 = vmatprep.subr.mxu1 %v282_v41  ;;  %1420 = vmatpush3.msra.mxu0 %v234_v42  ;;  %v333_v39 = vld [vmem:[#allocation5 + $0x920] sm:$0xff]  ;;  %v348_v41 = vld [vmem:[#allocation5 + $0x998] sm:$0xff] }
  0xa0   :  { %1455 = vmatpush3.msra.mxu1 %v266_v43  ;;  %1421 = vmatprep.subr.mxu0 %v249_v44  ;;  %v300_v42 = vld [vmem:[#allocation5 + $0x818] sm:$0xff]  ;;  %v315_v44 = vld [vmem:[#allocation5 + $0x890] sm:$0xff] }
  0xa1   :  { %1456 = vmatprep.subr.mxu1 %v281_v45  ;;  %1422 = vmatpush3.msra.mxu0 %v233_v48  ;;  %v332_v43 = vld [vmem:[#allocation5 + $0x918] sm:$0xff]  ;;  %v347_v45 = vld [vmem:[#allocation5 + $0x990] sm:$0xff] }
  0xa2   :  { %948 = vmatprep.mubr.f32.mxu0 %v419_v46  ;;  %1457 = vmatpush3.msra.mxu1 %v265_v50  ;;  %v299_v46 = vld [vmem:[#allocation5 + $0x810] sm:$0xff]  ;;  %v314_v50 = vld [vmem:[#allocation5 + $0x888] sm:$0xff] }
  0xa3   :  { %949 = vmatmul.mubr.f32.vlgmr.msra.gmra.mxu0 %v415_v49  ;;  %1018 = vmatprep.mubr.f32.mxu1 %v427_v51  ;;  %v331_v48 = vld [vmem:[#allocation5 + $0x910] sm:$0xff]  ;;  %v40_v49 = vld [vmem:[#allocation2 + $0x10] sm:$0xf]  ;;  %v346_v51 = vld [vmem:[#allocation5 + $0x988] sm:$0xff] }
  0xa4   :  { %1461 = vmatprep.subr.mxu0 %v328_v52  ;;  %1496 = vmatprep.subr.mxu1 %v360_v53  ;;  %v298_v52 = vld [vmem:[#allocation5 + $0x808] sm:$0xff]  ;;  %v313_v53 = vld [vmem:[#allocation5 + $0x880] sm:$0xff] }
  0xa5   :  { %1019 = vmatmul.mubr.f32.vlgmr.msra.gmra.mxu1 %v423_v7  ;;  %1462 = vmatpush3.msra.mxu0 %v312_v10  ;;  %v330_v7 = vld [vmem:[#allocation5 + $0x908] sm:$0xff]  ;;  %v345_v10 = vld [vmem:[#allocation5 + $0x980] sm:$0xff] }
  0xa6   :  { %1497 = vmatpush3.msra.mxu1 %v344_v54  ;;  %1463 = vmatprep.subr.mxu0 %v327_v55  ;;  %v435_v54 = vrot.slane %v40_v49, %v1631_v56  ;;  %v297_v55 = vld [vmem:[#allocation5 + $0x800] sm:$0xff] }
  0xa7   :  { %1498 = vmatprep.subr.mxu1 %v359_v57  ;;  %1464 = vmatpush3.msra.mxu0 %v311_v13  ;;  %v443_v57 = vrot.slane %v40_v49, %v1636_v60  ;;  %v329_v13 = vld [vmem:[#allocation5 + $0x900] sm:$0xff] }
  0xa8   :  { %1499 = vmatpush3.msra.mxu1 %v343_v58  ;;  %1465 = vmatprep.subr.mxu0 %v326_v47  ;;  %v431_v58 = vrot.slane %v40_v49, %v1639_v63  ;;  %v439_v47 = vrot.slane %v40_v49, %v1642_v0 }
  0xa9   :  { %1500 = vmatprep.subr.mxu1 %v358_v61  ;;  %1466 = vmatpush3.msra.mxu0 %v310_v16 }
  0xaa   :  { %1501 = vmatpush3.msra.mxu1 %v342_v26  ;;  %1467 = vmatprep.subr.mxu0 %v325_v62 }
  0xab   :  { %1502 = vmatprep.subr.mxu1 %v357_v1  ;;  %1468 = vmatpush3.msra.mxu0 %v309_v2 }
  0xac   :  { %1503 = vmatpush3.msra.mxu1 %v341_v3  ;;  %1469 = vmatprep.subr.mxu0 %v324_v4 }
  0xad   :  { %1504 = vmatprep.subr.mxu1 %v356_v5  ;;  %1470 = vmatpush3.msra.mxu0 %v308_v6 }
  0xae   :  { %1505 = vmatpush3.msra.mxu1 %v340_v8  ;;  %1471 = vmatprep.subr.mxu0 %v323_v9 }
  0xaf   :  { %1506 = vmatprep.subr.mxu1 %v355_v11  ;;  %1472 = vmatpush3.msra.mxu0 %v307_v12 }
  0xb0   :  { %1507 = vmatpush3.msra.mxu1 %v339_v14  ;;  %1473 = vmatprep.subr.mxu0 %v322_v15 }
  0xb1   :  { %1508 = vmatprep.subr.mxu1 %v354_v17  ;;  %1474 = vmatpush3.msra.mxu0 %v306_v18 }
  0xb2   :  { %1509 = vmatpush3.msra.mxu1 %v338_v19  ;;  %1475 = vmatprep.subr.mxu0 %v321_v20 }
  0xb3   :  { %1510 = vmatprep.subr.mxu1 %v353_v21  ;;  %1476 = vmatpush3.msra.mxu0 %v305_v22 }
  0xb4   :  { %1511 = vmatpush3.msra.mxu1 %v337_v23  ;;  %1477 = vmatprep.subr.mxu0 %v320_v24 }
  0xb5   :  { %1512 = vmatprep.subr.mxu1 %v352_v25  ;;  %1478 = vmatpush3.msra.mxu0 %v304_v27 }
  0xb6   :  { %1513 = vmatpush3.msra.mxu1 %v336_v28  ;;  %1479 = vmatprep.subr.mxu0 %v319_v29 }
  0xb7   :  { %1514 = vmatprep.subr.mxu1 %v351_v30  ;;  %1480 = vmatpush3.msra.mxu0 %v303_v31 }
  0xb8   :  { %1515 = vmatpush3.msra.mxu1 %v335_v32  ;;  %1481 = vmatprep.subr.mxu0 %v318_v33 }
  0xb9   :  { %1516 = vmatprep.subr.mxu1 %v350_v34  ;;  %1482 = vmatpush3.msra.mxu0 %v302_v59 }
  0xba   :  { %1517 = vmatpush3.msra.mxu1 %v334_v35  ;;  %1483 = vmatprep.subr.mxu0 %v317_v36 }
  0xbb   :  { %1518 = vmatprep.subr.mxu1 %v349_v37  ;;  %1484 = vmatpush3.msra.mxu0 %v301_v38 }
  0xbc   :  { %1519 = vmatpush3.msra.mxu1 %v333_v39  ;;  %1485 = vmatprep.subr.mxu0 %v316_v40 }
  0xbd   :  { %1520 = vmatprep.subr.mxu1 %v348_v41  ;;  %1486 = vmatpush3.msra.mxu0 %v300_v42 }
  0xbe   :  { %1521 = vmatpush3.msra.mxu1 %v332_v43  ;;  %1487 = vmatprep.subr.mxu0 %v315_v44 }
  0xbf   :  { %1522 = vmatprep.subr.mxu1 %v347_v45  ;;  %1488 = vmatpush3.msra.mxu0 %v299_v46 }
  0xc0   :  { %1523 = vmatpush3.msra.mxu1 %v331_v48  ;;  %1489 = vmatprep.subr.mxu0 %v314_v50 }
  0xc1   :  { %1524 = vmatprep.subr.mxu1 %v346_v51  ;;  %1490 = vmatpush3.msra.mxu0 %v298_v52 }
  0xc2   :  { %1525 = vmatpush3.msra.mxu1 %v330_v7  ;;  %1491 = vmatprep.subr.mxu0 %v313_v53 }
  0xc3   :  { %1526 = vmatprep.subr.mxu1 %v345_v10  ;;  %1492 = vmatpush3.msra.mxu0 %v297_v55 }
  0xc4   :  { %1088 = vmatprep.mubr.f32.mxu0 %v435_v54  ;;  %1527 = vmatpush3.msra.mxu1 %v329_v13 }
  0xc5   :  { %1158 = vmatprep.mubr.f32.mxu1 %v443_v57  ;;  %1089 = vmatmul.mubr.f32.vlgmr.msra.gmra.mxu0 %v431_v58 }
  0xc6   :  { %1159 = vmatmul.mubr.f32.vlgmr.msra.gmra.mxu1 %v439_v47 }
  0xfd   :  { %v1213_v56 = vpop.f32.mrf.mxu0 }
  0xfe   :  { %v1248_v61 = vpop.f32.mrf.mxu1 }
  0xff   :  { %v1214_v16 = vpop.f32.mrf.mxu0 }
 0x100   :  { %v1249_v60 = vpop.f32.mrf.mxu1  ;;  %v1215_v2 = vadd.f32 %v1214_v16, %v1213_v56 }
 0x101   :  { %v1250_v3 = vadd.f32 %v1249_v60, %v1248_v61 }
 0x103   :  { %v601_v5 = vadd.f32 %v1250_v3, %v1215_v2 }
 0x11f   :  { %v1283_v26 = vpop.f32.mrf.mxu0 }
 0x121   :  { %v1318_v62 = vpop.f32.mrf.mxu1  ;;  %v1284_v1 = vpop.f32.mrf.mxu0 }
 0x122   :  { %v1285_v4 = vadd.f32 %v1284_v1, %v1283_v26 }
 0x123   :  { %v1319_v0 = vpop.f32.mrf.mxu1 }
 0x124   :  { %v671_v9 = vadd.f32 %v1285_v4, %v601_v5  ;;  %v1320_v11 = vadd.f32 %v1319_v0, %v1318_v62 }
 0x126   :  { %v741_v17 = vadd.f32 %v1320_v11, %v671_v9 }
 0x141   :  { %v1353_v63 = vpop.f32.mrf.mxu0 }
 0x143   :  { %v1388_v6 = vpop.f32.mrf.mxu1  ;;  %v1354_v8 = vpop.f32.mrf.mxu0 }
 0x144   :  { %v1355_v14 = vadd.f32 %v1354_v8, %v1353_v63 }
 0x145   :  { %v1389_v15 = vpop.f32.mrf.mxu1 }
 0x146   :  { %v811_v20 = vadd.f32 %v1355_v14, %v741_v17  ;;  %v1390_v21 = vadd.f32 %v1389_v15, %v1388_v6 }
 0x148   :  { %v881_v24 = vadd.f32 %v1390_v21, %v811_v20 }
 0x163   :  { %v1423_v12 = vpop.f32.mrf.mxu0 }
 0x165   :  { %v1458_v18 = vpop.f32.mrf.mxu1  ;;  %v1424_v19 = vpop.f32.mrf.mxu0 }
 0x166   :  { %v1425_v22 = vadd.f32 %v1424_v19, %v1423_v12 }
 0x167   :  { %v1459_v23 = vpop.f32.mrf.mxu1 }
 0x168   :  { %v951_v25 = vadd.f32 %v1425_v22, %v881_v24  ;;  %v1460_v27 = vadd.f32 %v1459_v23, %v1458_v18 }
 0x16a   :  { %v1021_v32 = vadd.f32 %v1460_v27, %v951_v25 }
 0x185   :  { %v1493_v28 = vpop.f32.mrf.mxu0 }
 0x186   :  { %v1528_v29 = vpop.f32.mrf.mxu1 }
 0x187   :  { %v1494_v30 = vpop.f32.mrf.mxu0 }
 0x188   :  { %v1529_v31 = vpop.f32.mrf.mxu1  ;;  %v1495_v33 = vadd.f32 %v1494_v30, %v1493_v28 }
 0x189   :  { %v1530_v59 = vadd.f32 %v1529_v31, %v1528_v29 }
 0x18a   :  { %v1091_v34 = vadd.f32 %v1495_v33, %v1021_v32 }
 0x18c   :  { %v1161_v35 = vadd.f32 %v1530_v59, %v1091_v34 }
 0x18e   :  { %1164 = vst [vmem:[#allocation7] sm:$0x1] %v1161_v35 }
 0x18f   :  { %1587 = shalt.err (!%p1584_p0)
}
 0x190   :  { %1174 = dma.vmem_to_hbm [thread:$0]  %s1172_s1, 16, %s1699_s2, [#allocation4]  }
 0x191   :  { %1600 = dma.done.wait [#allocation4], 16  }
 0x192   :  { %1601 = vsyncadd [#allocation4], 4294967280 }
 0x193   :  { %1178 = vsyncpa [#allocation3], 1 }
 0x194   :  { %1179 = vsyncpa [#allocation6], 1 }
 0x195   :  { %1180 = vsyncpa [#allocation4], 1 }

</bundles_post_ra>
